<compile_context>
chip_gen: v6e
topology: v6e:2x2x1
jax: 0.10.0
libtpu: 0.0.40
codegen_flags: <defaults>
</compile_context>

<pallas_src>
import functools

import jax
import jax.numpy as jnp
from jax.experimental import pallas as pl
from jax.experimental.pallas import tpu as pltpu


def _layernorm_kernel(x_ref, w_ref, b_ref, o_ref, *, eps, inv_hidden):
    # x_ref: (block_rows, hidden)   w_ref / b_ref: (1, hidden) already f32
    x = x_ref[...].astype(jnp.float32)
    # Single pass over the tile for both moments (2 reads + 1 store total
    # per element including the final pass below).
    s1 = jnp.sum(x, axis=-1, keepdims=True)
    s2 = jnp.sum(x * x, axis=-1, keepdims=True)
    u = s1 * inv_hidden
    var = s2 * inv_hidden - u * u
    var = jnp.maximum(var, 0.0)                 # guard tiny negative cancellation
    inv = jax.lax.rsqrt(var + eps)              # eps inside sqrt; EUP slot
    out = (x - u) * inv * w_ref[...] + b_ref[...]
    o_ref[...] = out.astype(o_ref.dtype)


def _layernorm_ref(x, weight, bias, eps):
    """Pure-JAX fallback (lane-sparse / tiny shapes) and correctness reference."""
    xf = x.astype(jnp.float32)
    u = jnp.mean(xf, axis=-1, keepdims=True)
    d = xf - u
    s = jnp.mean(d * d, axis=-1, keepdims=True)
    y = d * jax.lax.rsqrt(s + eps)
    out = weight.astype(jnp.float32) * y + bias.astype(jnp.float32)
    return out.astype(x.dtype)


def _vmem_capacity_bytes():
    try:
        return int(pltpu.get_tpu_info().vmem_capacity_bytes)
    except Exception:
        return 64 * 1024 * 1024  # conservative (v7x-sized) if query unavailable


def _pick_block_rows(rows, hidden, itemsize, vmem_capacity):
    # Sublane packing: 8 rows/vreg-group for 4B dtypes, 16 for 2B, 32 for 1B.
    sublane = max(8, 32 // max(itemsize, 1))
    # Generation-aware per-block byte budget: bigger blocks amortize the
    # ~0.35 us per-grid-step overhead on v5e/v6e (128 MiB VMEM); tighter cap on
    # v7x (64 MiB VMEM) so double-buffered in+out stays well inside physical.
    if vmem_capacity >= 96 * 1024 * 1024:
        budget_bytes = 8 * 1024 * 1024
    else:
        budget_bytes = 4 * 1024 * 1024
    base = 512 if itemsize >= 4 else 1024
    cap = max(sublane, budget_bytes // (hidden * itemsize))
    br = min(base, cap, rows)
    if br < rows:
        # Sub-full blocks must respect (8,128) tiling; align to sublane packing.
        br = max(sublane, (br // sublane) * sublane)
    return br


def bert_layer_norm(x, weight, bias, eps=1e-12, block_rows=None,
                    small_bytes_threshold=1 << 20):
    """x: (..., hidden); weight/bias: (hidden,). Returns same shape/dtype as x."""
    orig_shape = x.shape
    hidden = orig_shape[-1]
    rows = 1
    for d in orig_shape[:-1]:
        rows *= d

    itemsize = jnp.dtype(x.dtype).itemsize

    # Lane-dense gate: hidden must fill 128-lane vregs or stores degrade to
    # masked partial vst.  Tiny slabs also skip Pallas (setup cost dominates).
    if (hidden % 128 != 0 or rows == 0
            or rows * hidden * itemsize < small_bytes_threshold):
        return _layernorm_ref(x, weight, bias, eps)

    x2 = x.reshape(rows, hidden)
    # Cast the tiny (hidden,) params to f32 once here instead of every grid
    # step inside the kernel; constant block index keeps them VMEM-resident.
    w2 = weight.astype(jnp.float32).reshape(1, hidden)
    b2 = bias.astype(jnp.float32).reshape(1, hidden)

    vmem_capacity = _vmem_capacity_bytes()
    if block_rows is None:
        block_rows = _pick_block_rows(rows, hidden, itemsize, vmem_capacity)
    block_rows = min(block_rows, rows)
    grid = (pl.cdiv(rows, block_rows),)

    # Scoped VMEM limit: generous on v5e/v6e (128 MiB physical, 16/32 MiB
    # defaults), capped on v7x (64 MiB physical).
    vmem_limit = 64 * 1024 * 1024 if vmem_capacity >= 96 * 1024 * 1024 \
        else 48 * 1024 * 1024

    cost = pl.CostEstimate(
        flops=8 * rows * hidden,
        transcendentals=rows,
        bytes_accessed=2 * rows * hidden * itemsize + 2 * hidden * 4,
    )

    kernel = functools.partial(_layernorm_kernel, eps=eps,
                               inv_hidden=1.0 / float(hidden))
    out = pl.pallas_call(
        kernel,
        out_shape=jax.ShapeDtypeStruct((rows, hidden), x.dtype),
        grid_spec=pltpu.PrefetchScalarGridSpec(
            num_scalar_prefetch=0,
            grid=grid,
            in_specs=[
                pl.BlockSpec((block_rows, hidden), lambda i: (i, 0)),
                # Constant block index -> weight/bias stay resident in VMEM.
                pl.BlockSpec((1, hidden), lambda i: (0, 0)),
                pl.BlockSpec((1, hidden), lambda i: (0, 0)),
            ],
            out_specs=pl.BlockSpec((block_rows, hidden), lambda i: (i, 0)),
        ),
        compiler_params=pltpu.CompilerParams(
            # Row axis is embarrassingly parallel; on v7x this lets the grid
            # shard across both TensorCores (swap to pltpu.CORE_PARALLEL if a
            # trace shows only one TC executing grid steps).
            dimension_semantics=("parallel",),
            vmem_limit_bytes=vmem_limit,
        ),
        cost_estimate=cost,
    )(x2, w2, b2)
    return out.reshape(orig_shape)


if __name__ == "__main__":
    key = jax.random.PRNGKey(0)
    eps = 1e-12

    # --- Pallas path (f32, lane-dense hidden); force past the tiny-slab gate.
    batch, seq, hidden = 2, 8, 128
    x = jax.random.normal(key, (batch, seq, hidden), dtype=jnp.float32)
    weight = 1.0 + 0.1 * jax.random.normal(jax.random.fold_in(key, 1), (hidden,),
                                           dtype=jnp.float32)
    bias = 0.1 * jax.random.normal(jax.random.fold_in(key, 2), (hidden,),
                                   dtype=jnp.float32)

    y = bert_layer_norm(x, weight, bias, eps=eps, small_bytes_threshold=0)
    jax.block_until_ready(y)
    ref = _layernorm_ref(x, weight, bias, eps)
    assert jnp.allclose(y, ref, atol=1e-5, rtol=1e-5), "mismatch (pallas f32 path)"

    # --- Pallas path (bf16 input; sublane-aligned block_rows path).
    x_bf = x.astype(jnp.bfloat16)
    y_bf = bert_layer_norm(x_bf, weight, bias, eps=eps, small_bytes_threshold=0)
    jax.block_until_ready(y_bf)
    ref_bf = _layernorm_ref(x_bf, weight, bias, eps)
    assert jnp.allclose(y_bf.astype(jnp.float32), ref_bf.astype(jnp.float32),
                        atol=2e-2, rtol=2e-2), "mismatch (pallas bf16 path)"

    # --- Fallback path: original hidden=32 module config (lane-sparse -> XLA).
    h2 = 32
    x_s = jax.random.normal(jax.random.fold_in(key, 3), (2, 8, h2), dtype=jnp.float32)
    w_s = jnp.ones((h2,), dtype=jnp.float32)
    b_s = jnp.zeros((h2,), dtype=jnp.float32)
    y_s = bert_layer_norm(x_s, w_s, b_s, eps=eps)
    jax.block_until_ready(y_s)
    u_s = jnp.mean(x_s, axis=-1, keepdims=True)
    s_s = jnp.mean((x_s - u_s) ** 2, axis=-1, keepdims=True)
    ref_s = w_s * ((x_s - u_s) / jnp.sqrt(s_s + eps)) + b_s
    assert jnp.allclose(y_s, ref_s, atol=1e-5, rtol=1e-5), "mismatch (fallback path)"

    print("KERNEL_OK")
</pallas_src>

<mosaic_0001>
module attributes {stable_mosaic.version = 11 : i64} {
  func.func @_layernorm_kernel(%arg0: i32, %arg1: memref<16x128xf32, #tpu.memory_space<vmem>>, %arg2: memref<1x128xf32, #tpu.memory_space<vmem>>, %arg3: memref<1x128xf32, #tpu.memory_space<vmem>>, %arg4: memref<16x128xf32, #tpu.memory_space<vmem>>) attributes {dimension_semantics = [#tpu.dimension_semantics<parallel>], iteration_bounds = array<i64: 1>, scalar_prefetch = 0 : i64, scratch_operands = 0 : i64, tpu.core_type = #tpu.core_type<tc>, window_params = [{transform_indices = @transform_0, window_bounds = array<i64: 16, 128>}, {pipeline_mode = #tpu.pipeline_mode<synchronous>, transform_indices = @transform_1, window_bounds = array<i64: 1, 128>}, {pipeline_mode = #tpu.pipeline_mode<synchronous>, transform_indices = @transform_2, window_bounds = array<i64: 1, 128>}, {transform_indices = @transform_3, window_bounds = array<i64: 16, 128>}]} {
    %c0 = arith.constant 0 : index
    %c0_0 = arith.constant 0 : index
    %0 = vector.load %arg1[%c0, %c0_0] : memref<16x128xf32, #tpu.memory_space<vmem>>, vector<16x128xf32>
    %cst = arith.constant dense<0.000000e+00> : vector<16xf32>
    %1 = vector.multi_reduction <add>, %0, %cst [1] : vector<16x128xf32> to vector<16xf32>
    %2 = vector.shape_cast %1 : vector<16xf32> to vector<16x1xf32>
    %3 = arith.mulf %0, %0 : vector<16x128xf32>
    %cst_1 = arith.constant dense<0.000000e+00> : vector<16xf32>
    %4 = vector.multi_reduction <add>, %3, %cst_1 [1] : vector<16x128xf32> to vector<16xf32>
    %5 = vector.shape_cast %4 : vector<16xf32> to vector<16x1xf32>
    %cst_2 = arith.constant 7.812500e-03 : f32
    %6 = vector.broadcast %cst_2 : f32 to vector<16x1xf32>
    %7 = arith.mulf %2, %6 : vector<16x1xf32>
    %cst_3 = arith.constant 7.812500e-03 : f32
    %8 = vector.broadcast %cst_3 : f32 to vector<16x1xf32>
    %9 = arith.mulf %5, %8 : vector<16x1xf32>
    %10 = arith.mulf %7, %7 : vector<16x1xf32>
    %11 = arith.subf %9, %10 : vector<16x1xf32>
    %cst_4 = arith.constant 0.000000e+00 : f32
    %12 = vector.broadcast %cst_4 : f32 to vector<16x1xf32>
    %13 = arith.maximumf %11, %12 : vector<16x1xf32>
    %cst_5 = arith.constant 9.99999996E-13 : f32
    %14 = vector.broadcast %cst_5 : f32 to vector<16x1xf32>
    %15 = arith.addf %13, %14 : vector<16x1xf32>
    %16 = math.rsqrt %15 : vector<16x1xf32>
    %17 = vector.broadcast %7 : vector<16x1xf32> to vector<16x128xf32>
    %18 = arith.subf %0, %17 : vector<16x128xf32>
    %19 = vector.broadcast %16 : vector<16x1xf32> to vector<16x128xf32>
    %20 = arith.mulf %18, %19 : vector<16x128xf32>
    %c0_6 = arith.constant 0 : index
    %c0_7 = arith.constant 0 : index
    %21 = vector.load %arg2[%c0_6, %c0_7] : memref<1x128xf32, #tpu.memory_space<vmem>>, vector<1x128xf32>
    %22 = vector.broadcast %21 : vector<1x128xf32> to vector<16x128xf32>
    %23 = arith.mulf %20, %22 : vector<16x128xf32>
    %c0_8 = arith.constant 0 : index
    %c0_9 = arith.constant 0 : index
    %24 = vector.load %arg3[%c0_8, %c0_9] : memref<1x128xf32, #tpu.memory_space<vmem>>, vector<1x128xf32>
    %25 = vector.broadcast %24 : vector<1x128xf32> to vector<16x128xf32>
    %26 = arith.addf %23, %25 : vector<16x128xf32>
    %c0_10 = arith.constant 0 : index
    %c0_11 = arith.constant 0 : index
    %27 = vector.load %arg4[%c0_10, %c0_11] : memref<16x128xf32, #tpu.memory_space<vmem>>, vector<16x128xf32>
    tpu.vector_store %arg4[%c0_10, %c0_11], %26 {strides = array<i32>} : memref<16x128xf32, #tpu.memory_space<vmem>>, vector<16x128xf32>,
    return
  }
  func.func @transform_0(%arg0: i32) -> (i32, i32) {
    %c0_i32 = arith.constant 0 : i32
    %c0_i32_0 = arith.constant 0 : i32
    return %arg0, %c0_i32 : i32, i32
  }
  func.func @transform_1(%arg0: i32) -> (i32, i32) {
    %c0_i32 = arith.constant 0 : i32
    %c0_i32_0 = arith.constant 0 : i32
    %c0_i32_1 = arith.constant 0 : i32
    return %c0_i32, %c0_i32_0 : i32, i32
  }
  func.func @transform_2(%arg0: i32) -> (i32, i32) {
    %c0_i32 = arith.constant 0 : i32
    %c0_i32_0 = arith.constant 0 : i32
    %c0_i32_1 = arith.constant 0 : i32
    return %c0_i32, %c0_i32_0 : i32, i32
  }
  func.func @transform_3(%arg0: i32) -> (i32, i32) {
    %c0_i32 = arith.constant 0 : i32
    %c0_i32_0 = arith.constant 0 : i32
    return %arg0, %c0_i32 : i32, i32
  }
}

</mosaic_0001>

<bundles_post_ra>
// kernel: tpu_custom_call.1
= control target key start
LH: loop header
LB: loop body
LE: loop exit
PB: predicated region body
PF: predicated region fallthrough
CT: control target
= control target key end

     0   :  { %8 = vsyncpa [#allocation3], 0  ;;  %s192_s0 = inlined_call_operand.hbm [shape: f32[16,128], index: 0, kind: input, shape index: {}]   ;;  %s193_s1 = inlined_call_operand.vmem [shape: f32[1,128], index: 1, kind: input, shape index: {}]   ;;  %s194_s2 = inlined_call_operand.vmem [shape: f32[1,128], index: 2, kind: input, shape index: {}]   ;;  %s195_s3 = inlined_call_operand.hbm [shape: f32[16,128], index: 3, kind: output, shape index: {}]  }
   0x1   :  { %9 = vsyncpa [#allocation4], 0  ;;  %s150_s12 = smov [#allocation2]  }
   0x2   :  { %s15_s13 = sshll.u32 %s150_s12, 4  ;;  %s16_s13 = int_to_ptr.vmem [resolvable:$true] %s15_s13 }
   0x3   :  { %s114_s14 = scalar_lea.vmem %s16_s13, 256  ;;  %p119_p1 = scmp.lt.s32.totalorder %s16_s13, %s16_s13 }
   0x4   :  { %p115_p0 = scmp.ne.s32.totalorder %s16_s13, %s114_s14  ;;  %p120_p2 = scmp.lt.s32.totalorder %s114_s14, %s114_s14 }
   0x6   :  { %p121_p3 = por %p120_p2, %p119_p1 }
   0x8   :  { %p122_p4 = pnand %p121_p3, %p115_p0 }
   0xa   :  { %125 = shalt.err (!%p122_p4)
}
   0xb   :  { %s151_s15 = smov 128   ;;  %s152_s16 = smov 8  }
   0xc   :  { %21 = dma.hbm_to_vmem [thread:$0]  %s192_s0, 256, %s16_s13, [#allocation3], %s151_s15, %s151_s15, %s152_s16  }
   0xd   :  { %146 = dma.done.wait [#allocation3], 256  }
   0xe   :  { %147 = vsyncadd [#allocation3], 4294967040  ;;  %v29_v0 = vld [vmem:[#allocation2] sm:$0xff]  ;;  %v30_v1 = vld [vmem:[#allocation2 + $0x8] sm:$0xff]  ;;  %s153_s22 = smov [#allocation5]  }
   0xf   :  { %31 = vadd.xlane.f32.xlu0 %v29_v0  ;;  %v35_v2 = vmul.f32 %v29_v0, %v29_v0  ;;  %v36_v3 = vmul.f32 %v30_v1, %v30_v1  ;;  %v96_v22 = vld [vmem:[%s193_s1] ss:$0 sm:$0xff]  ;;  %s84_s23 = sshll.u32 %s153_s22, 4  ;;  %s85_s23 = int_to_ptr.vmem [resolvable:$true] %s84_s23 }
  0x10   :  { %v97_v24 = vld [vmem:[%s194_s2] ss:$0 sm:$0xff]  ;;  %s126_s24 = scalar_lea.vmem %s85_s23, 256  ;;  %p131_p6 = scmp.lt.s32.totalorder %s85_s23, %s85_s23 }
  0x11   :  { %37 = vadd.xlane.f32.xlu1 %v35_v2  ;;  %p127_p5 = scmp.ne.s32.totalorder %s85_s23, %s126_s24  ;;  %p132_p7 = scmp.lt.s32.totalorder %s126_s24, %s126_s24 }
  0x13   :  { %33 = vadd.xlane.f32.xlu0 %v30_v1  ;;  %p133_p8 = por %p132_p7, %p131_p6 }
  0x15   :  { %39 = vadd.xlane.f32.xlu1 %v36_v3  ;;  %p134_p9 = pnand %p133_p8, %p127_p5 }
  0x98   :  { %v32_v4 = vpop.xlane.xlu0 %31 }
  0x99   :  { %v41_v5 = vmul.f32 0.0078125, %v32_v4 }
  0x9a   :  { %v38_v6 = vpop.xlane.xlu1 %37 }
  0x9b   :  { %v45_v7 = vmul.f32 %v41_v5, %v41_v5  ;;  %v43_v8 = vmul.f32 0.0078125, %v38_v6  ;;  %v55_v20 = vsub.f32 %v29_v0, %v41_v5 }
  0x9c   :  { %v34_v9 = vpop.xlane.xlu0 %33 }
  0x9d   :  { %v47_v10 = vsub.f32 %v43_v8, %v45_v7  ;;  %v42_v11 = vmul.f32 0.0078125, %v34_v9 }
  0x9e   :  { %v40_v12 = vpop.xlane.xlu1 %39 }
  0x9f   :  { %v49_v13 = vmax.f32 %v47_v10, 0.0  ;;  %v46_v14 = vmul.f32 %v42_v11, %v42_v11  ;;  %v44_v15 = vmul.f32 0.0078125, %v40_v12  ;;  %v56_v25 = vsub.f32 %v30_v1, %v42_v11 }
  0xa1   :  { %v51_v16 = vadd.f32 1e-12, %v49_v13  ;;  %v48_v17 = vsub.f32 %v44_v15, %v46_v14 }
  0xa3   :  { %102 = vrsqrt.f32 %v51_v16  ;;  %v50_v18 = vmax.f32 %v48_v17, 0.0 }
  0xa5   :  { %v52_v19 = vadd.f32 1e-12, %v50_v18 }
  0xa7   :  { %104 = vrsqrt.f32 %v52_v19 }
  0xb0   :  { %v103_v21 = vpop.eup %102 }
  0xb1   :  { %v57_v23 = vmul.f32 %v103_v21, %v55_v20 }
  0xb3   :  { %v66_v26 = vmul.f32 %v96_v22, %v57_v23 }
  0xb4   :  { %v105_v27 = vpop.eup %104 }
  0xb5   :  { %v58_v28 = vmul.f32 %v105_v27, %v56_v25  ;;  %v75_v29 = vadd.f32 %v97_v24, %v66_v26 }
  0xb7   :  { %v67_v30 = vmul.f32 %v96_v22, %v58_v28  ;;  %77 = vst [vmem:[#allocation5] sm:$0xff] %v75_v29 }
  0xb9   :  { %v76_v31 = vadd.f32 %v97_v24, %v67_v30 }
  0xbb   :  { %78 = vst [vmem:[#allocation5 + $0x8] sm:$0xff] %v76_v31 }
  0xbc   :  { %137 = shalt.err (!%p134_p9)
}
  0xbd   :  { %90 = dma.vmem_to_hbm [thread:$0]  %s85_s23, 256, %s195_s3, [#allocation4], %s151_s15, %s151_s15, %s152_s16  }
  0xbe   :  { %148 = dma.done.wait [#allocation4], 256  }
  0xbf   :  { %149 = vsyncadd [#allocation4], 4294967040 }
  0xc0   :  { %94 = vsyncpa [#allocation3], 1 }
  0xc1   :  { %95 = vsyncpa [#allocation4], 1 }

</bundles_post_ra>
